<compile_context>
chip_gen: v7x
topology: tpu7x:2x2x1
jax: 0.10.0
libtpu: 0.0.40
codegen_flags: <defaults>
</compile_context>

<pallas_src>
import functools

import jax
import jax.numpy as jnp
from jax.experimental import pallas as pl
from jax.experimental.pallas import tpu as pltpu

LANE = 128                       # lane width
TM_MAX = 4096                    # max tile height (rows of 128 lanes): 2 MiB f32 per input tile
VMEM_LIMIT_BYTES = 32 * 1024 * 1024   # fits v7x (64 MiB phys), raises v5e's 16 MiB default


def _detect_ncores():
    """TensorCores behind one JAX device: 2 only on megacore parts, else 1."""
    try:
        kind = jax.devices()[0].device_kind.lower()
    except Exception:
        return 1
    # Megacore chips expose two TensorCores behind a single device.
    if any(tag in kind for tag in ("v4", "v5p", "v7", "tpu7")):
        return 2
    return 1


NCORES = _detect_ncores()


def _loss_kernel(x_ref, y_ref, bce_ref, jac_ref, *, blocks, j_per_part, guarded):
    """Accumulate partial sums of the (positive) BCE term and the Jaccard term.

    Outputs are (1, 8, LANE) blocks resident in VMEM across the reduction axis;
    each grid step reduces its (TM, LANE) tile down to one vreg and adds it in.
    """
    p = pl.program_id(0)   # core partition (one per TensorCore on megacore parts)
    j = pl.program_id(1)   # sequential reduction step within the partition

    @pl.when(j == 0)
    def _init():
        bce_ref[...] = jnp.zeros_like(bce_ref)
        jac_ref[...] = jnp.zeros_like(jac_ref)

    def _accumulate():
        x = x_ref[...].astype(jnp.float32)
        y = y_ref[...].astype(jnp.float32)
        tm = x.shape[0]

        # torch.BCELoss clamps both log terms at -100.
        log_x = jnp.maximum(jnp.log(x), -100.0)
        log_1mx = jnp.maximum(jnp.log(1.0 - x), -100.0)
        # y*log(x) + (1-y)*log(1-x), refactored to one multiply per element;
        # accumulated positive here and negated once in the wrapper.
        bce_term = log_1mx + y * (log_x - log_1mx)

        # Jaccard term: divide moved to the EUP reciprocal slot; one Newton
        # refinement step keeps the error at ~f32 precision.
        xy = x * y
        d = x + y - xy
        r = pl.reciprocal(d, approx=True)
        r = r * (2.0 - d * r)
        jac_term = xy * r

        # Reduce each (tm, LANE) tile to a single (8, LANE) vreg before
        # accumulating: the reshape groups whole (8,128) vregs (no tile-boundary
        # crossing), so the axis-0 sum is pure VALU vreg adds.
        # TODO(synk): for extremely large inputs a pairwise/tree reduce here
        # would bound f32 accumulation error further; loss-level impact is tiny.
        bce_ref[...] += bce_term.reshape(tm // 8, 8, LANE).sum(axis=0).reshape(1, 8, LANE)
        jac_ref[...] += jac_term.reshape(tm // 8, 8, LANE).sum(axis=0).reshape(1, 8, LANE)

    if guarded:
        # Uneven split across partitions: the clamped duplicate tile(s) are
        # DMA'd but their contribution is skipped.
        @pl.when(p * j_per_part + j < blocks)
        def _guarded():
            _accumulate()
    else:
        _accumulate()


def _partial_sums_jnp(x, y):
    """Plain-XLA partial sums (sub-tile remainders / tiny or ragged inputs)."""
    x = x.astype(jnp.float32)
    y = y.astype(jnp.float32)
    log_x = jnp.maximum(jnp.log(x), -100.0)
    log_1mx = jnp.maximum(jnp.log(1.0 - x), -100.0)
    bce_pos = jnp.sum(log_1mx + y * (log_x - log_1mx))
    xy = x * y
    jac = jnp.sum(xy / (x + y - xy))
    return bce_pos, jac


def bce_loss_with_jaccard(x, y):
    """Pallas implementation of BCELossWithJaccard.forward(x, y)."""
    assert x.shape == y.shape
    n = x.size

    xf = x.reshape(-1)   # metadata-only reshape; no padded copy of the inputs
    yf = y.reshape(-1)

    bce_pos_sum = jnp.float32(0.0)
    jac_sum = jnp.float32(0.0)

    # Sub-32-bit dtypes pack sublanes: round tile height to the native tile.
    itemsize = jnp.dtype(x.dtype).itemsize
    sub = {4: 8, 2: 16, 1: 32}.get(itemsize, 8)

    rows = n // LANE
    if n % LANE == 0 and rows >= sub:
        x2d = xf.reshape(rows, LANE)
        y2d = yf.reshape(rows, LANE)

        tm = min(TM_MAX, (rows // sub) * sub)   # tile height, dtype-aligned
        blocks = rows // tm                     # whole tiles handled by Pallas
        rows_bulk = blocks * tm

        # Only split across cores when there is more than one tile of work.
        ncores = NCORES if blocks >= 2 else 1
        j_per_part = -(-blocks // ncores)       # ceil-div: tiles per partition
        guarded = ncores * j_per_part > blocks  # uneven split -> guard dup tile

        def idx_map(pp, jj):
            b = pp * j_per_part + jj
            if guarded:                          # static Python condition
                b = jnp.minimum(b, blocks - 1)
            return (b, 0)

        if ncores >= 2:
            # CORE_PARALLEL is the semantics value that actually shards a grid
            # axis across the two TensorCores of a megacore chip.
            dim_sem = (getattr(pltpu, "CORE_PARALLEL", "parallel"),
                       getattr(pltpu, "ARBITRARY", "arbitrary"))
        else:
            dim_sem = ("arbitrary", "arbitrary")

        kernel = functools.partial(
            _loss_kernel, blocks=blocks, j_per_part=j_per_part, guarded=guarded)

        bce_parts, jac_parts = pl.pallas_call(
            kernel,
            out_shape=(
                jax.ShapeDtypeStruct((ncores, 8, LANE), jnp.float32),
                jax.ShapeDtypeStruct((ncores, 8, LANE), jnp.float32),
            ),
            grid_spec=pltpu.PrefetchScalarGridSpec(
                num_scalar_prefetch=0,
                grid=(ncores, j_per_part),
                in_specs=[
                    pl.BlockSpec((tm, LANE), idx_map),
                    pl.BlockSpec((tm, LANE), idx_map),
                ],
                out_specs=(
                    pl.BlockSpec((1, 8, LANE), lambda pp, jj: (pp, 0, 0)),
                    pl.BlockSpec((1, 8, LANE), lambda pp, jj: (pp, 0, 0)),
                ),
            ),
            compiler_params=pltpu.CompilerParams(
                dimension_semantics=dim_sem,
                vmem_limit_bytes=VMEM_LIMIT_BYTES),
        )(x2d, y2d)

        # Final lane/sublane reduce of the lane-dense partials happens here,
        # outside the kernel (one tiny XLA reduce, not per grid step).
        bce_pos_sum += jnp.sum(bce_parts)
        jac_sum += jnp.sum(jac_parts)

        if rows_bulk < rows:
            # Sub-tile ragged remainder (< TM rows): tiny, fold in with plain jnp.
            bt, jt = _partial_sums_jnp(x2d[rows_bulk:], y2d[rows_bulk:])
            bce_pos_sum += bt
            jac_sum += jt
    else:
        # TODO(synk): ragged inputs (numel not a multiple of 128) and tiny inputs
        # fall back to plain XLA instead of a masked Pallas path.
        bt, jt = _partial_sums_jnp(xf, yf)
        bce_pos_sum += bt
        jac_sum += jt

    # Scalar glue (matches torch semantics).
    bce = -bce_pos_sum / n
    jaccard = jac_sum / n
    return bce - jnp.log(jaccard + 1e-12)


def _reference(x, y):
    x = x.astype(jnp.float32)
    y = y.astype(jnp.float32)
    bce = jnp.mean(
        -(y * jnp.maximum(jnp.log(x), -100.0)
          + (1.0 - y) * jnp.maximum(jnp.log(1.0 - x), -100.0))
    )
    xy = x * y
    jaccard = jnp.mean(xy / (x + y - xy))
    return bce - jnp.log(jaccard + 1e-12)


if __name__ == "__main__":
    key = jax.random.PRNGKey(0)
    kx, ky = jax.random.split(key)

    # x: predicted probabilities in (0,1); y: binary targets. NCHW [2,4,16,16].
    x = jax.nn.sigmoid(jax.random.normal(kx, (2, 4, 16, 16), dtype=jnp.float32))
    y = jax.random.bernoulli(ky, 0.5, (2, 4, 16, 16)).astype(jnp.float32)
    # Avoid exact-zero Jaccard denominator (same requirement as the torch module).
    y = jnp.clip(y, 1e-3, 1.0)

    loss_fn = jax.jit(bce_loss_with_jaccard)
    loss = jax.block_until_ready(loss_fn(x, y))
    ref = _reference(x, y)

    assert jnp.allclose(loss, ref, rtol=1e-4, atol=1e-5), (loss, ref)
    print("KERNEL_OK")
</pallas_src>

<mosaic_0001>
module attributes {stable_mosaic.version = 11 : i64} {
  func.func @_loss_kernel(%arg0: i32, %arg1: i32, %arg2: memref<16x128xf32, #tpu.memory_space<vmem>>, %arg3: memref<16x128xf32, #tpu.memory_space<vmem>>, %arg4: memref<1x8x128xf32, #tpu.memory_space<vmem>>, %arg5: memref<1x8x128xf32, #tpu.memory_space<vmem>>) attributes {dimension_semantics = [#tpu.dimension_semantics<arbitrary>, #tpu.dimension_semantics<arbitrary>], iteration_bounds = array<i64: 1, 1>, scalar_prefetch = 0 : i64, scratch_operands = 0 : i64, tpu.core_type = #tpu.core_type<tc>, window_params = [{transform_indices = @transform_0, window_bounds = array<i64: 16, 128>}, {transform_indices = @transform_1, window_bounds = array<i64: 16, 128>}, {transform_indices = @transform_2, window_bounds = array<i64: 1, 8, 128>}, {transform_indices = @transform_3, window_bounds = array<i64: 1, 8, 128>}]} {
    %c0_i32 = arith.constant 0 : i32
    %0 = arith.cmpi eq, %arg1, %c0_i32 : i32
    %1 = arith.extui %0 : i1 to i32
    %c0_i32_0 = arith.constant 0 : i32
    %2 = arith.cmpi ne, %1, %c0_i32_0 : i32
    scf.if %2 {
      %cst_21 = arith.constant 0.000000e+00 : f32
      %37 = vector.broadcast %cst_21 : f32 to vector<1x8x128xf32>
      %c0_22 = arith.constant 0 : index
      %c0_23 = arith.constant 0 : index
      %c0_24 = arith.constant 0 : index
      %38 = vector.load %arg4[%c0_22, %c0_23, %c0_24] : memref<1x8x128xf32, #tpu.memory_space<vmem>>, vector<1x8x128xf32>
      tpu.vector_store %arg4[%c0_22, %c0_23, %c0_24], %37 {strides = array<i32>} : memref<1x8x128xf32, #tpu.memory_space<vmem>>, vector<1x8x128xf32>,
      %cst_25 = arith.constant 0.000000e+00 : f32
      %39 = vector.broadcast %cst_25 : f32 to vector<1x8x128xf32>
      %c0_26 = arith.constant 0 : index
      %c0_27 = arith.constant 0 : index
      %c0_28 = arith.constant 0 : index
      %40 = vector.load %arg5[%c0_26, %c0_27, %c0_28] : memref<1x8x128xf32, #tpu.memory_space<vmem>>, vector<1x8x128xf32>
      tpu.vector_store %arg5[%c0_26, %c0_27, %c0_28], %39 {strides = array<i32>} : memref<1x8x128xf32, #tpu.memory_space<vmem>>, vector<1x8x128xf32>,
    } else {
    }
    %c0 = arith.constant 0 : index
    %c0_1 = arith.constant 0 : index
    %3 = vector.load %arg2[%c0, %c0_1] : memref<16x128xf32, #tpu.memory_space<vmem>>, vector<16x128xf32>
    %c0_2 = arith.constant 0 : index
    %c0_3 = arith.constant 0 : index
    %4 = vector.load %arg3[%c0_2, %c0_3] : memref<16x128xf32, #tpu.memory_space<vmem>>, vector<16x128xf32>
    %5 = math.log %3 : vector<16x128xf32>
    %cst = arith.constant -1.000000e+02 : f32
    %6 = vector.broadcast %cst : f32 to vector<16x128xf32>
    %7 = arith.maximumf %5, %6 : vector<16x128xf32>
    %cst_4 = arith.constant 1.000000e+00 : f32
    %8 = vector.broadcast %cst_4 : f32 to vector<16x128xf32>
    %9 = arith.subf %8, %3 : vector<16x128xf32>
    %10 = math.log %9 : vector<16x128xf32>
    %cst_5 = arith.constant -1.000000e+02 : f32
    %11 = vector.broadcast %cst_5 : f32 to vector<16x128xf32>
    %12 = arith.maximumf %10, %11 : vector<16x128xf32>
    %13 = arith.subf %7, %12 : vector<16x128xf32>
    %14 = arith.mulf %4, %13 : vector<16x128xf32>
    %15 = arith.addf %12, %14 : vector<16x128xf32>
    %16 = arith.mulf %3, %4 : vector<16x128xf32>
    %17 = arith.addf %3, %4 : vector<16x128xf32>
    %18 = arith.subf %17, %16 : vector<16x128xf32>
    %19 = tpu.reciprocal %18 {approx = true} : vector<16x128xf32> -> vector<16x128xf32>
    %20 = arith.mulf %18, %19 : vector<16x128xf32>
    %cst_6 = arith.constant 2.000000e+00 : f32
    %21 = vector.broadcast %cst_6 : f32 to vector<16x128xf32>
    %22 = arith.subf %21, %20 : vector<16x128xf32>
    %23 = arith.mulf %19, %22 : vector<16x128xf32>
    %24 = arith.mulf %16, %23 : vector<16x128xf32>
    %c0_7 = arith.constant 0 : index
    %c0_8 = arith.constant 0 : index
    %c0_9 = arith.constant 0 : index
    %25 = vector.load %arg4[%c0_7, %c0_8, %c0_9] : memref<1x8x128xf32, #tpu.memory_space<vmem>>, vector<1x8x128xf32>
    %26 = vector.shape_cast %15 : vector<16x128xf32> to vector<2x8x128xf32>
    %cst_10 = arith.constant dense<0.000000e+00> : vector<8x128xf32>
    %27 = vector.multi_reduction <add>, %26, %cst_10 [0] : vector<2x8x128xf32> to vector<8x128xf32>
    %28 = vector.shape_cast %27 : vector<8x128xf32> to vector<1x8x128xf32>
    %29 = arith.addf %25, %28 : vector<1x8x128xf32>
    %c0_11 = arith.constant 0 : index
    %c0_12 = arith.constant 0 : index
    %c0_13 = arith.constant 0 : index
    %30 = vector.load %arg4[%c0_11, %c0_12, %c0_13] : memref<1x8x128xf32, #tpu.memory_space<vmem>>, vector<1x8x128xf32>
    tpu.vector_store %arg4[%c0_11, %c0_12, %c0_13], %29 {strides = array<i32>} : memref<1x8x128xf32, #tpu.memory_space<vmem>>, vector<1x8x128xf32>,
    %c0_14 = arith.constant 0 : index
    %c0_15 = arith.constant 0 : index
    %c0_16 = arith.constant 0 : index
    %31 = vector.load %arg5[%c0_14, %c0_15, %c0_16] : memref<1x8x128xf32, #tpu.memory_space<vmem>>, vector<1x8x128xf32>
    %32 = vector.shape_cast %24 : vector<16x128xf32> to vector<2x8x128xf32>
    %cst_17 = arith.constant dense<0.000000e+00> : vector<8x128xf32>
    %33 = vector.multi_reduction <add>, %32, %cst_17 [0] : vector<2x8x128xf32> to vector<8x128xf32>
    %34 = vector.shape_cast %33 : vector<8x128xf32> to vector<1x8x128xf32>
    %35 = arith.addf %31, %34 : vector<1x8x128xf32>
    %c0_18 = arith.constant 0 : index
    %c0_19 = arith.constant 0 : index
    %c0_20 = arith.constant 0 : index
    %36 = vector.load %arg5[%c0_18, %c0_19, %c0_20] : memref<1x8x128xf32, #tpu.memory_space<vmem>>, vector<1x8x128xf32>
    tpu.vector_store %arg5[%c0_18, %c0_19, %c0_20], %35 {strides = array<i32>} : memref<1x8x128xf32, #tpu.memory_space<vmem>>, vector<1x8x128xf32>,
    return
  }
  func.func @transform_0(%arg0: i32, %arg1: i32) -> (i32, i32) {
    %c1_i32 = arith.constant 1 : i32
    %0 = arith.muli %arg0, %c1_i32 : i32
    %1 = arith.addi %0, %arg1 : i32
    %c0_i32 = arith.constant 0 : i32
    %c0_i32_0 = arith.constant 0 : i32
    return %1, %c0_i32 : i32, i32
  }
  func.func @transform_1(%arg0: i32, %arg1: i32) -> (i32, i32) {
    %c1_i32 = arith.constant 1 : i32
    %0 = arith.muli %arg0, %c1_i32 : i32
    %1 = arith.addi %0, %arg1 : i32
    %c0_i32 = arith.constant 0 : i32
    %c0_i32_0 = arith.constant 0 : i32
    return %1, %c0_i32 : i32, i32
  }
  func.func @transform_2(%arg0: i32, %arg1: i32) -> (i32, i32, i32) {
    %c0_i32 = arith.constant 0 : i32
    %c0_i32_0 = arith.constant 0 : i32
    %c0_i32_1 = arith.constant 0 : i32
    return %arg0, %c0_i32, %c0_i32_0 : i32, i32, i32
  }
  func.func @transform_3(%arg0: i32, %arg1: i32) -> (i32, i32, i32) {
    %c0_i32 = arith.constant 0 : i32
    %c0_i32_0 = arith.constant 0 : i32
    %c0_i32_1 = arith.constant 0 : i32
    return %arg0, %c0_i32, %c0_i32_0 : i32, i32, i32
  }
}

</mosaic_0001>

<bundles_post_ra>
// kernel: bce_loss_with_jaccard.1
= control target key start
LH: loop header
LB: loop body
LE: loop exit
PB: predicated region body
PF: predicated region fallthrough
CT: control target
= control target key end

     0   :  { %s182_s0 = inlined_call_operand.vmem [shape: f32[16,128], index: 0, kind: input, shape index: {}]   ;;  %s183_s1 = inlined_call_operand.vmem [shape: f32[16,128], index: 1, kind: input, shape index: {}]   ;;  %s184_s2 = inlined_call_operand.vmem [shape: f32[1,8,128], index: 2, kind: output, shape index: {0}]   ;;  %s185_s3 = inlined_call_operand.vmem [shape: f32[1,8,128], index: 3, kind: output, shape index: {1}]  }
   0x1   :  { %v63_v0 = vld [vmem:[%s182_s0] sm:$0xff]  ;;  %v64_v1 = vld [vmem:[%s182_s0 + $0x8] sm:$0xff] }
   0x2   :  { %v65_v2 = vld [vmem:[%s183_s1] sm:$0xff]  ;;  %v66_v3 = vld [vmem:[%s183_s1 + $0x8] sm:$0xff]  ;;  %132 = vlog2.f32 %v63_v0  ;;  %v73_v4 = vsub.f32 1.0, %v63_v0  ;;  %v74_v5 = vsub.f32 1.0, %v64_v1 }
   0x3   :  { %v87_v6 = vmul.f32 %v65_v2, %v63_v0  ;;  %134 = vlog2.f32 %v64_v1  ;;  %v88_v7 = vmul.f32 %v66_v3, %v64_v1  ;;  %v89_v8 = vadd.f32 %v65_v2, %v63_v0 }
   0x4   :  { %v90_v9 = vadd.f32 %v66_v3, %v64_v1  ;;  %136 = vlog2.f32 %v73_v4 }
   0x5   :  { %138 = vlog2.f32 %v74_v5  ;;  %v91_v10 = vsub.f32 %v89_v8, %v87_v6 }
   0x6   :  { %v92_v11 = vsub.f32 %v90_v9, %v88_v7 }
   0x7   :  { %140 = vrcp.f32 %v91_v10 }
   0x8   :  { %142 = vrcp.f32 %v92_v11 }
   0xc   :  { %v133_v12 = vpop.eup %132 }
   0xd   :  { %v135_v13 = vpop.eup %134  ;;  %v68_v14 = vmul.f32 0.6931472, %v133_v12 }
   0xe   :  { %v137_v15 = vpop.eup %136  ;;  %v70_v16 = vmul.f32 0.6931472, %v135_v13 }
   0xf   :  { %v139_v17 = vpop.eup %138  ;;  %v71_v18 = vmax.f32 %v68_v14, -100.0  ;;  %v76_v19 = vmul.f32 0.6931472, %v137_v15 }
  0x10   :  { %v72_v20 = vmax.f32 %v70_v16, -100.0  ;;  %v78_v21 = vmul.f32 0.6931472, %v139_v17 }
  0x11   :  { %v141_v22 = vpop.eup %140  ;;  %v79_v23 = vmax.f32 %v76_v19, -100.0 }
  0x12   :  { %v143_v24 = vpop.eup %142  ;;  %v80_v25 = vmax.f32 %v78_v21, -100.0  ;;  %v95_v26 = vmul.f32 %v141_v22, %v91_v10 }
  0x13   :  { %v81_v27 = vsub.f32 %v71_v18, %v79_v23  ;;  %v96_v28 = vmul.f32 %v143_v24, %v92_v11 }
  0x14   :  { %v82_v29 = vsub.f32 %v72_v20, %v80_v25  ;;  %v97_v30 = vsub.f32 2.0, %v95_v26 }
  0x15   :  { %v83_v31 = vmul.f32 %v81_v27, %v65_v2  ;;  %v98_v32 = vsub.f32 2.0, %v96_v28 }
  0x16   :  { %v84_v33 = vmul.f32 %v82_v29, %v66_v3  ;;  %v99_v34 = vmul.f32 %v141_v22, %v97_v30 }
  0x17   :  { %v85_v35 = vadd.f32 %v83_v31, %v79_v23  ;;  %v100_v36 = vmul.f32 %v143_v24, %v98_v32 }
  0x18   :  { %v86_v37 = vadd.f32 %v84_v33, %v80_v25  ;;  %v101_v38 = vmul.f32 %v99_v34, %v87_v6 }
  0x19   :  { %v102_v39 = vmul.f32 %v100_v36, %v88_v7 }
  0x1a   :  { %v104_v40 = vadd.f32 %v86_v37, %v85_v35 }
  0x1b   :  { %v108_v41 = vadd.f32 %v102_v39, %v101_v38 }
  0x1c   :  { %106 = vst [vmem:[%s184_s2] sm:$0xff] %v104_v40 }
  0x1d   :  { %110 = vst [vmem:[%s185_s3] sm:$0xff] %v108_v41 }

</bundles_post_ra>
